<compile_context>
chip_gen: v7x
topology: tpu7x:2x2x1
jax: 0.10.0
libtpu: 0.0.40
codegen_flags: <defaults>
</compile_context>

<pallas_src>
import functools

import jax
import jax.numpy as jnp
from jax import lax
from jax.experimental import pallas as pl
from jax.experimental.pallas import tpu as pltpu


def _round_up(n, m):
    return ((n + m - 1) // m) * m


# ----------------------------- in-kernel helpers ---------------------------

def _branch_act(z, c1, c2):
    """Per-branch activation by lane index: [0,c1)=relu, [c1,c2)=silu, [c2,128)=relu6."""
    col = lax.broadcasted_iota(jnp.int32, z.shape, 1)
    relu_v = jnp.maximum(z, 0.0)
    # SiLU with EUP-friendly ops (exp + approximate reciprocal; no VALU divide).
    sig = pl.reciprocal(1.0 + jnp.exp(-z), approx=True)
    silu_v = z * sig
    # TODO(synk): on v6e/v7x this elementwise block could run in bf16 for ~2x VPU/EUP throughput.
    return jnp.where(col < c1, relu_v,
                     jnp.where(col < c2, silu_v, jnp.minimum(relu_v, 6.0)))


# ----------------------------- Pallas kernels ------------------------------

def fused_ensemble_flat_kernel(x_ref, wc_ref, bc_ref, wh_ref, bh_ref, o_ref,
                               *, imgs_per_tile, hw_pad, hw_valid, c1, c2):
    """One grid step: whole images, single pass (no cross-step accumulator).

    x_ref : (imgs_per_tile*hw_pad, K_pad) bf16 im2col patches
    wc_ref: (K_pad, 128)  bf16 concatenated stem weights (resnet|effnet|mobilenet)
    bc_ref: (1, 128)      f32 concatenated stem biases
    wh_ref: (128, 128)    bf16 block-diagonal, pre-averaged head weights (padded)
    bh_ref: (1, 128)      f32 pre-averaged head bias (padded)
    o_ref : (imgs_per_tile, 128) f32 padded averaged logits (cols 0:2 valid)
    """
    z = jnp.dot(x_ref[...], wc_ref[...], preferred_element_type=jnp.float32)
    z = z + bc_ref[...]                                   # (rows, 128) f32
    act = _branch_act(z, c1, c2)

    # Per-image global-average-pool: split rows by image, sum sublanes.
    a3 = act.reshape(imgs_per_tile, hw_pad, act.shape[-1])
    if hw_pad != hw_valid:                                 # only if spatial padding exists
        r = lax.broadcasted_iota(jnp.int32, a3.shape, 1)
        a3 = jnp.where(r < hw_valid, a3, 0.0)
    pooled = jnp.sum(a3, axis=1) * (1.0 / hw_valid)        # (imgs_per_tile, 128)

    logits = jnp.dot(pooled.astype(wh_ref.dtype), wh_ref[...],
                     preferred_element_type=jnp.float32) + bh_ref[...]
    o_ref[...] = logits


def fused_ensemble_acc_kernel(x_ref, wc_ref, bc_ref, wh_ref, bh_ref, o_ref,
                              acc_ref, *, hw_valid, ts, c1, c2):
    """Fallback for large hw: (batch, spatial-tile) grid with a GAP accumulator."""
    s = pl.program_id(1)
    last = pl.num_programs(1) - 1

    @pl.when(s == 0)
    def _():
        acc_ref[...] = jnp.zeros_like(acc_ref)

    z = jnp.dot(x_ref[...], wc_ref[...], preferred_element_type=jnp.float32)
    z = z + bc_ref[...]
    act = _branch_act(z, c1, c2)

    if hw_valid % ts == 0:
        acc_ref[...] += jnp.sum(act, axis=0, keepdims=True)
    else:
        @pl.when(s != last)
        def _():
            acc_ref[...] += jnp.sum(act, axis=0, keepdims=True)

        @pl.when(s == last)
        def _():
            row = lax.broadcasted_iota(jnp.int32, act.shape, 0)
            masked = jnp.where(row < (hw_valid - s * ts), act, 0.0)
            acc_ref[...] += jnp.sum(masked, axis=0, keepdims=True)

    @pl.when(s == last)
    def _():
        pooled = acc_ref[...] * (1.0 / hw_valid)
        logits = jnp.dot(pooled.astype(wh_ref.dtype), wh_ref[...],
                         preferred_element_type=jnp.float32) + bh_ref[...]
        o_ref[...] = logits


# ------------------------------- JAX glue ---------------------------------

def _im2col(x, kh, kw, stride, pad):
    """x: (B, C, H, W) NCHW -> patches (B, Ho*Wo, C*kh*kw), channel-major."""
    x = jnp.pad(x, ((0, 0), (0, 0), (pad, pad), (pad, pad)))
    B, C, H, W = x.shape
    Ho = (H - kh) // stride + 1
    Wo = (W - kw) // stride + 1
    cols = []
    for i in range(kh):
        for j in range(kw):
            cols.append(x[:, :, i:i + stride * Ho:stride, j:j + stride * Wo:stride])
    cols = jnp.stack(cols, axis=2)                       # (B, C, kh*kw, Ho, Wo)
    cols = cols.transpose(0, 3, 4, 1, 2)                 # (B, Ho, Wo, C, kh*kw)
    return cols.reshape(B, Ho * Wo, C * kh * kw), Ho, Wo


def ensemble_forward(params, x):
    """x: (B, 3, H, W) NCHW float32 -> (B, 2) averaged logits."""
    B = x.shape[0]
    kh = kw = 3
    stride, pad = 2, 1
    TS_CAP = 2048                                        # rows per tile (mult. of 8)

    # --- im2col once (in bf16), shared by all three branches ---
    patches, ho, wo = _im2col(x.astype(jnp.bfloat16), kh, kw, stride, pad)
    hw = ho * wo
    K = patches.shape[-1]
    K_pad = _round_up(K, 32)                             # 27 -> 32: sublane-clean MXU operand
    if K_pad != K:
        patches = jnp.pad(patches, ((0, 0), (0, 0), (0, K_pad - K)))

    p_res, p_eff, p_mob = params["resnet"], params["efficientnet"], params["mobilenet"]

    # --- concatenated stem weights: lane-dense Cout = 64 + 32 + 32 = 128 ---
    def _wmat(p):
        return p["w"].reshape(p["w"].shape[0], -1).T     # (K, Cout_branch)

    w_cat = jnp.concatenate([_wmat(p_res["stem"]),
                             _wmat(p_eff["stem"]),
                             _wmat(p_mob["stem"])], axis=1)              # (K, 128)
    b_cat = jnp.concatenate([p_res["stem"]["b"],
                             p_eff["stem"]["b"],
                             p_mob["stem"]["b"]], axis=0)[None, :].astype(jnp.float32)
    cout = w_cat.shape[1]
    c1 = p_res["stem"]["w"].shape[0]                     # 64
    c2 = c1 + p_eff["stem"]["w"].shape[0]                # 96
    if K_pad != K:
        w_cat = jnp.pad(w_cat, ((0, K_pad - K), (0, 0)))
    w_cat_b = w_cat.astype(jnp.bfloat16)

    # --- fused, pre-averaged classifier head (bf16), padded to 128 output lanes ---
    n_cls = p_res["fc"]["w"].shape[1]                    # 2
    head_w = jnp.zeros((cout, 128), jnp.float32)
    head_w = head_w.at[0:c1, :n_cls].set(p_res["fc"]["w"] / 3.0)
    head_w = head_w.at[c1:c2, :n_cls].set(p_eff["fc"]["w"] / 3.0)
    head_w = head_w.at[c2:cout, :n_cls].set(p_mob["fc"]["w"] / 3.0)
    head_w_b = head_w.astype(jnp.bfloat16)
    head_b = jnp.zeros((1, 128), jnp.float32)
    head_b = head_b.at[:, :n_cls].set(
        (p_res["fc"]["b"] + p_eff["fc"]["b"] + p_mob["fc"]["b"]) / 3.0)

    hw_pad = _round_up(hw, 8)

    if hw_pad <= TS_CAP:
        # ---- Path A: batch flattened into matmul rows; one parallel grid axis ----
        imgs_per_tile = max(1, min(B, TS_CAP // hw_pad))
        # Keep >= 2 independent tiles when B >= 2 so both TensorCores (v7x) get work.
        if B >= 2 and B // imgs_per_tile < 2:
            imgs_per_tile = max(1, (B + 1) // 2)
        B_pad = _round_up(B, imgs_per_tile)
        if hw_pad != hw or B_pad != B:
            patches = jnp.pad(patches, ((0, B_pad - B), (0, hw_pad - hw), (0, 0)))
        ts = imgs_per_tile * hw_pad
        n_tiles = B_pad // imgs_per_tile
        patches_flat = patches.reshape(B_pad * hw_pad, K_pad)

        out = pl.pallas_call(
            functools.partial(fused_ensemble_flat_kernel,
                              imgs_per_tile=imgs_per_tile, hw_pad=hw_pad,
                              hw_valid=hw, c1=c1, c2=c2),
            out_shape=jax.ShapeDtypeStruct((n_tiles, imgs_per_tile, 128), jnp.float32),
            grid=(n_tiles,),
            in_specs=[
                pl.BlockSpec((ts, K_pad), lambda t: (t, 0)),
                pl.BlockSpec((K_pad, cout), lambda t: (0, 0)),
                pl.BlockSpec((1, cout), lambda t: (0, 0)),
                pl.BlockSpec((cout, 128), lambda t: (0, 0)),
                pl.BlockSpec((1, 128), lambda t: (0, 0)),
            ],
            out_specs=pl.BlockSpec((None, imgs_per_tile, 128), lambda t: (t, 0, 0)),
            compiler_params=pltpu.CompilerParams(
                dimension_semantics=("parallel",)),
        )(patches_flat, w_cat_b, b_cat, head_w_b, head_b)
        return out.reshape(B_pad, 128)[:B, :n_cls]        # (B, 2)

    # ---- Path B: large hw -> spatial tiling with GAP accumulator ----
    ts = TS_CAP
    hw_pad2 = _round_up(hw, ts)
    if hw_pad2 != hw:
        patches = jnp.pad(patches, ((0, 0), (0, hw_pad2 - hw), (0, 0)))
    n_s = hw_pad2 // ts

    out = pl.pallas_call(
        functools.partial(fused_ensemble_acc_kernel,
                          hw_valid=hw, ts=ts, c1=c1, c2=c2),
        out_shape=jax.ShapeDtypeStruct((B, 1, 128), jnp.float32),
        grid=(B, n_s),
        in_specs=[
            pl.BlockSpec((None, ts, K_pad), lambda b, s: (b, s, 0),
                         pipeline_mode=pl.Buffered(3)),
            pl.BlockSpec((K_pad, cout), lambda b, s: (0, 0)),
            pl.BlockSpec((1, cout), lambda b, s: (0, 0)),
            pl.BlockSpec((cout, 128), lambda b, s: (0, 0)),
            pl.BlockSpec((1, 128), lambda b, s: (0, 0)),
        ],
        out_specs=pl.BlockSpec((None, 1, 128), lambda b, s: (b, 0, 0)),
        scratch_shapes=[pltpu.VMEM((1, 128), jnp.float32)],
        compiler_params=pltpu.CompilerParams(
            dimension_semantics=("parallel", "arbitrary")),
    )(patches, w_cat_b, b_cat, head_w_b, head_b)
    return out[:, 0, :n_cls]                             # (B, 2)


# -------------------------- parameters / model -----------------------------

def _conv_params(k, cout, cin, kh, kw):
    kw_, kb_ = jax.random.split(k)
    fan_in = cin * kh * kw
    return {
        "w": jax.random.normal(kw_, (cout, cin, kh, kw), jnp.float32) * (2.0 / fan_in) ** 0.5,
        "b": jax.random.normal(kb_, (cout,), jnp.float32) * 0.01,
    }


def _linear_params(k, din, dout):
    kw_, kb_ = jax.random.split(k)
    return {
        "w": jax.random.normal(kw_, (din, dout), jnp.float32) * (1.0 / din) ** 0.5,
        "b": jax.random.normal(kb_, (1, dout), jnp.float32) * 0.01,
    }


def init_ensemble_params(key):
    ks = jax.random.split(key, 6)
    return {
        # resnet18-like stem (relu), fc -> 2
        "resnet": {"stem": _conv_params(ks[0], 64, 3, 3, 3),
                   "fc": _linear_params(ks[1], 64, 2)},
        # efficientnet_b0-like stem (silu), classifier[1] -> 2
        "efficientnet": {"stem": _conv_params(ks[2], 32, 3, 3, 3),
                         "fc": _linear_params(ks[3], 32, 2)},
        # mobilenet_v2-like stem (relu6), classifier[1] -> 2
        "mobilenet": {"stem": _conv_params(ks[4], 32, 3, 3, 3),
                      "fc": _linear_params(ks[5], 32, 2)},
    }


# --------------------------------- main ------------------------------------

if __name__ == "__main__":
    key = jax.random.PRNGKey(0)
    k_x, k_p = jax.random.split(key)

    x = jax.random.normal(k_x, (2, 3, 32, 32), jnp.float32)   # NCHW, 3-channel image
    params = init_ensemble_params(k_p)

    out = jax.jit(ensemble_forward)(params, x)
    out = jax.block_until_ready(out)

    assert out.shape == (2, 2), out.shape
    assert jnp.all(jnp.isfinite(out))
    print("KERNEL_OK")
</pallas_src>

<mosaic_0001>
module attributes {stable_mosaic.version = 11 : i64} {
  func.func @fused_ensemble_flat_kernel(%arg0: i32, %arg1: memref<256x32xbf16, #tpu.memory_space<vmem>>, %arg2: memref<32x128xbf16, #tpu.memory_space<vmem>>, %arg3: memref<1x128xf32, #tpu.memory_space<vmem>>, %arg4: memref<128x128xbf16, #tpu.memory_space<vmem>>, %arg5: memref<1x128xf32, #tpu.memory_space<vmem>>, %arg6: memref<1x1x128xf32, #tpu.memory_space<vmem>>) attributes {dimension_semantics = [#tpu.dimension_semantics<parallel>], iteration_bounds = array<i64: 2>, scalar_prefetch = 0 : i64, scratch_operands = 0 : i64, tpu.core_type = #tpu.core_type<tc>, window_params = [{transform_indices = @transform_0, window_bounds = array<i64: 256, 32>}, {pipeline_mode = #tpu.pipeline_mode<synchronous>, transform_indices = @transform_1, window_bounds = array<i64: 32, 128>}, {pipeline_mode = #tpu.pipeline_mode<synchronous>, transform_indices = @transform_2, window_bounds = array<i64: 1, 128>}, {pipeline_mode = #tpu.pipeline_mode<synchronous>, transform_indices = @transform_3, window_bounds = array<i64: 128, 128>}, {pipeline_mode = #tpu.pipeline_mode<synchronous>, transform_indices = @transform_4, window_bounds = array<i64: 1, 128>}, {transform_indices = @transform_5, window_bounds = array<i64: 1, 1, 128>}]} {
    %c0 = arith.constant 0 : index
    %c0_0 = arith.constant 0 : index
    %0 = vector.load %arg1[%c0, %c0_0] : memref<256x32xbf16, #tpu.memory_space<vmem>>, vector<256x32xbf16>
    %c0_1 = arith.constant 0 : index
    %c0_2 = arith.constant 0 : index
    %1 = vector.load %arg2[%c0_1, %c0_2] : memref<32x128xbf16, #tpu.memory_space<vmem>>, vector<32x128xbf16>
    %cst = arith.constant dense<0.000000e+00> : vector<256x128xf32>
    %2 = tpu.matmul %0, %1, %cst {dimension_numbers = #tpu.dot_dimension_numbers<[1], [0], [0], [1], [0, 0, 1, 1], [], []>} : vector<256x32xbf16>, vector<32x128xbf16>, vector<256x128xf32> -> vector<256x128xf32>
    %c0_3 = arith.constant 0 : index
    %c0_4 = arith.constant 0 : index
    %3 = vector.load %arg3[%c0_3, %c0_4] : memref<1x128xf32, #tpu.memory_space<vmem>>, vector<1x128xf32>
    %4 = vector.broadcast %3 : vector<1x128xf32> to vector<256x128xf32>
    %5 = arith.addf %2, %4 : vector<256x128xf32>
    %6 = tpu.iota {dimensions = array<i32: 1>} : vector<256x128xi32>
    %cst_5 = arith.constant 0.000000e+00 : f32
    %7 = vector.broadcast %cst_5 : f32 to vector<256x128xf32>
    %8 = arith.maximumf %5, %7 : vector<256x128xf32>
    %cst_6 = arith.constant 0.000000e+00 : f32
    %9 = vector.broadcast %cst_6 : f32 to vector<256x128xf32>
    %10 = arith.subf %9, %5 : vector<256x128xf32>
    %11 = math.exp %10 : vector<256x128xf32>
    %cst_7 = arith.constant 1.000000e+00 : f32
    %12 = vector.broadcast %cst_7 : f32 to vector<256x128xf32>
    %13 = arith.addf %12, %11 : vector<256x128xf32>
    %14 = tpu.reciprocal %13 {approx = true} : vector<256x128xf32> -> vector<256x128xf32>
    %15 = arith.mulf %5, %14 : vector<256x128xf32>
    %c64_i32 = arith.constant 64 : i32
    %16 = vector.broadcast %c64_i32 : i32 to vector<256x128xi32>
    %17 = arith.cmpi slt, %6, %16 : vector<256x128xi32>
    %c96_i32 = arith.constant 96 : i32
    %18 = vector.broadcast %c96_i32 : i32 to vector<256x128xi32>
    %19 = arith.cmpi slt, %6, %18 : vector<256x128xi32>
    %cst_8 = arith.constant 6.000000e+00 : f32
    %20 = vector.broadcast %cst_8 : f32 to vector<256x128xf32>
    %21 = arith.minimumf %8, %20 : vector<256x128xf32>
    %22 = arith.select %19, %15, %21 : vector<256x128xi1>, vector<256x128xf32>
    %23 = arith.select %17, %8, %22 : vector<256x128xi1>, vector<256x128xf32>
    %24 = vector.shape_cast %23 : vector<256x128xf32> to vector<1x256x128xf32>
    %cst_9 = arith.constant dense<0.000000e+00> : vector<1x128xf32>
    %25 = vector.multi_reduction <add>, %24, %cst_9 [1] : vector<1x256x128xf32> to vector<1x128xf32>
    %cst_10 = arith.constant 3.906250e-03 : f32
    %26 = vector.broadcast %cst_10 : f32 to vector<1x128xf32>
    %27 = arith.mulf %25, %26 : vector<1x128xf32>
    %28 = arith.truncf %27 : vector<1x128xf32> to vector<1x128xbf16>
    %c0_11 = arith.constant 0 : index
    %c0_12 = arith.constant 0 : index
    %29 = vector.load %arg4[%c0_11, %c0_12] : memref<128x128xbf16, #tpu.memory_space<vmem>>, vector<128x128xbf16>
    %cst_13 = arith.constant dense<0.000000e+00> : vector<1x128xf32>
    %30 = tpu.matmul %28, %29, %cst_13 {dimension_numbers = #tpu.dot_dimension_numbers<[1], [0], [0], [1], [0, 0, 1, 1], [], []>} : vector<1x128xbf16>, vector<128x128xbf16>, vector<1x128xf32> -> vector<1x128xf32>
    %c0_14 = arith.constant 0 : index
    %c0_15 = arith.constant 0 : index
    %31 = vector.load %arg5[%c0_14, %c0_15] : memref<1x128xf32, #tpu.memory_space<vmem>>, vector<1x128xf32>
    %32 = arith.addf %30, %31 : vector<1x128xf32>
    %c0_16 = arith.constant 0 : index
    %c0_17 = arith.constant 0 : index
    %c0_18 = arith.constant 0 : index
    %33 = vector.load %arg6[%c0_16, %c0_17, %c0_18] : memref<1x1x128xf32, #tpu.memory_space<vmem>>, vector<1x1x128xf32>
    %34 = vector.shape_cast %33 : vector<1x1x128xf32> to vector<1x128xf32>
    %35 = vector.shape_cast %32 : vector<1x128xf32> to vector<1x1x128xf32>
    tpu.vector_store %arg6[%c0_16, %c0_17, %c0_18], %35 {strides = array<i32>} : memref<1x1x128xf32, #tpu.memory_space<vmem>>, vector<1x1x128xf32>,
    return
  }
  func.func @transform_0(%arg0: i32) -> (i32, i32) {
    %c0_i32 = arith.constant 0 : i32
    %c0_i32_0 = arith.constant 0 : i32
    return %arg0, %c0_i32 : i32, i32
  }
  func.func @transform_1(%arg0: i32) -> (i32, i32) {
    %c0_i32 = arith.constant 0 : i32
    %c0_i32_0 = arith.constant 0 : i32
    %c0_i32_1 = arith.constant 0 : i32
    return %c0_i32, %c0_i32_0 : i32, i32
  }
  func.func @transform_2(%arg0: i32) -> (i32, i32) {
    %c0_i32 = arith.constant 0 : i32
    %c0_i32_0 = arith.constant 0 : i32
    %c0_i32_1 = arith.constant 0 : i32
    return %c0_i32, %c0_i32_0 : i32, i32
  }
  func.func @transform_3(%arg0: i32) -> (i32, i32) {
    %c0_i32 = arith.constant 0 : i32
    %c0_i32_0 = arith.constant 0 : i32
    %c0_i32_1 = arith.constant 0 : i32
    return %c0_i32, %c0_i32_0 : i32, i32
  }
  func.func @transform_4(%arg0: i32) -> (i32, i32) {
    %c0_i32 = arith.constant 0 : i32
    %c0_i32_0 = arith.constant 0 : i32
    %c0_i32_1 = arith.constant 0 : i32
    return %c0_i32, %c0_i32_0 : i32, i32
  }
  func.func @transform_5(%arg0: i32) -> (i32, i32, i32) {
    %c0_i32 = arith.constant 0 : i32
    %c0_i32_0 = arith.constant 0 : i32
    %c0_i32_1 = arith.constant 0 : i32
    return %arg0, %c0_i32, %c0_i32_0 : i32, i32, i32
  }
}

</mosaic_0001>

<bundles_post_ra>
// kernel: ensemble_forward.1
= control target key start
LH: loop header
LB: loop body
LE: loop exit
PB: predicated region body
PF: predicated region fallthrough
CT: control target
= control target key end

     0   :  { %10 = vsyncpa [#allocation3], 0  ;;  %s2105_s0 = inlined_call_operand.vmem [shape: bf16[512,32], index: 0, kind: input, shape index: {}]   ;;  %s2106_s1 = inlined_call_operand.vmem [shape: bf16[32,128], index: 1, kind: input, shape index: {}]   ;;  %s2107_s2 = inlined_call_operand.vmem [shape: f32[1,128], index: 2, kind: input, shape index: {}]   ;;  %s2108_s3 = inlined_call_operand.vmem [shape: bf16[128,128], index: 3, kind: input, shape index: {}]   ;;  %s2109_s4 = inlined_call_operand.vmem [shape: f32[1,128], index: 4, kind: input, shape index: {}]   ;;  %s2110_s5 = inlined_call_operand.hbm [shape: f32[2,1,128], index: 5, kind: output, shape index: {}]  }
   0x1   :  { %12 = vsyncpa [#allocation3 + $0x1], 0  ;;  %s1534_s18 = smov 0   ;;  %s1536_s19 = smov 0  }
   0x2   :  { %s1538_s20 = smov 0   ;;  %s1540_s21 = smov 0  }
   0x3 LB: > { %s1555_s22 = sadd.s32 4294967295, %s1499_s21   ;;  %s1107_s23 = sadd.s32 4294967294, %s1499_s21   ;;  %s1499_s21 = sphi %s1540_s21, %s2116_s21   ;;  %s1495_s20 = sphi %s1538_s20, %s2115_s20   ;;  %s1491_s19 = sphi %s1536_s19, %s2114_s19   ;;  %s1487_s18 = sphi %s1534_s18, %s2113_s18  }
   0x4   : > { %s1559_s24 = sadd.s32 1, %s1499_s21   ;;  %s135_s25 = sadd.s32 1, %s1495_s20 }
   0x5   : > { %s132_s26 = ssub.s32 %s1499_s21, %s1559_s24  ;;  %p145_p0 = scmp.ne.s32.totalorder %s1495_s20, %s1491_s19 }
   0x6   : > { %p133_p1 = scmp.eq.s32.totalorder %s132_s26, 0  ;;  %p146_p2 = scmp.eq.s32.totalorder %s1555_s22, 1 }
   0x7   : > { %p151_p3 = scmp.ne.s32.totalorder %s1491_s19, %s1487_s18  ;;  %p152_p4 = scmp.eq.s32.totalorder %s1107_s23, 1 }
   0x8   : > { %s1570_s27 = scalar_select %p133_p1, %s1495_s20, %s135_s25  }
   0x9   : > { %p1572_p5 = por %p146_p2, %p145_p0  ;;  %p1576_p6 = por %p152_p4, %p151_p3 }
   0xa   : > { %p1110_p7 = scmp.ge.s32.totalorder %s1499_s21, 1  ;;  %p191_p8 = scmp.lt.s32.totalorder %s1499_s21, 3 }
   0xc   : > { %p192_p9 = pnand %p1110_p7, %p191_p8 }
   0xd   : > { %v1283_v0 = vld [vmem:[%s2106_s1] sm:$0xff] (!%p192_p9)   ;;  %s1111_s7 = sshll.u32 (!%p192_p9), %s1555_s22, 5  ;;  %v1284_v1 = vld [vmem:[%s2106_s1 + $0x8] sm:$0xff] (!%p192_p9)   ;;  %vm360_vm0 = vcmask (!%p192_p9), 261120   ;;  %v1501_v19 = vmov (!%p192_p9), 0.0   ;;  %v1303_v21 = vld [vmem:[%s2108_s3 + $0x10] sm:$0xff] (!%p192_p9)   ;;  %v570_v59 = vlaneseq (!%p192_p9) }
   0xe   : > { %195 = sbr.rel (%p192_p9) target bundleno = 605 (0x25d), region = 40  ;;  %p219_p10 = scmp.lt.s32.totalorder (!%p192_p9), %s1111_s7, 63  ;;  %1186 = vmatprep.subr.bf16.mxu0 (!%p192_p9), %v1283_v0  ;;  %v1301_v18 = vld [vmem:[%s2108_s3] sm:$0xff] (!%p192_p9)   ;;  %1222 = vmatprep.subr.bf16.mxu1 (!%p192_p9), %v1501_v19  ;;  %v1302_v20 = vld [vmem:[%s2108_s3 + $0x8] sm:$0xff] (!%p192_p9)   ;;  %v1304_v22 = vld [vmem:[%s2108_s3 + $0x18] sm:$0xff] (!%p192_p9)   ;;  %vm1502_vm1 = vmmov (!%p192_p9), 0  }
   0xf   : > { %1187 = vmatpush3.bf16.msra.mxu0 (!%p192_p9), %v1283_v0  ;;  %1223 = vmatpush3.bf16.msra.mxu1 (!%p192_p9), %v1301_v18  ;;  %v1305_v23 = vld [vmem:[%s2108_s3 + $0x20] sm:$0xff] (!%p192_p9)   ;;  %v1306_v26 = vld [vmem:[%s2108_s3 + $0x28] sm:$0xff] (!%p192_p9)   ;;  %v1307_v36 = vld [vmem:[%s2108_s3 + $0x30] sm:$0xff] (!%p192_p9)   ;;  %s216_s16 = sand.u32 (!%p192_p9), 1, %s1491_s19   ;;  %s1156_s25 = sshll.u32 (!%p192_p9), %s1555_s22, 4 }
  0x10   : > { %1188 = vmatprep.subr.bf16.mxu0 (!%p192_p9), %v1284_v1  ;;  %1224 = vmatprep.subr.bf16.mxu1 (!%p192_p9), %v1501_v19  ;;  %v1644_v24 = vld [vmem:[%s2107_s2] ss:$0 sm:$0xff] (!%p192_p9)  ;;  %v1308_v44 = vld [vmem:[%s2108_s3 + $0x38] sm:$0xff] (!%p192_p9)   ;;  %s217_s26 = scalar_lea.vmem (!%p192_p9), [#allocation2], %s216_s16  ;;  %s2063_s8 = scalar_lea.hbm (!%p192_p9), %s2110_s5, %s1156_s25 }
  0x11   : > { %1238 = vmatprep.mubr.msk.bf16.mxu1 (!%p192_p9), %vm1502_vm1, %v1501_v19  ;;  %s1052_s30 = sshll.u32 (!%p192_p9), %s217_s26, 4  ;;  %s1040_s9 = scalar_lea.sflag (!%p192_p9), [#allocation3], %s216_s16  ;;  %s2065_s30 = int_to_ptr.vmem [resolvable:$true] %s1052_s30 }
  0x12   : > { %s1437_s22 = scalar_lea.vmem (!%p192_p9), %s2065_s30, 16 }
  0x13   : > { %1189 = vmatpush3.bf16.msra.mxu0 (!%p192_p9), %v1284_v1  ;;  %1225 = vmatpush3.bf16.msra.mxu1 (!%p192_p9), %v1302_v20  ;;  %p1438_p11 = scmp.ne.s32.totalorder (!%p192_p9), %s2065_s30, %s1437_s22 }
  0x14   : > { %1226 = vmatprep.subr.bf16.mxu1 (!%p192_p9), %v1501_v19 }
  0x15   : > { %s2118_s7 = smov (!%p219_p10, %s1111_s7), 63  ;;  %p1439_p12 = pnand %p1438_p11, %p1572_p5 }
  0x16   : > { %s1112_s10 = sshll.u32 %s2118_s7, 2 }
  0x17   : > { %s1592_s13 = scalar_lea.vmem %s2105_s0, %s1112_s10  ;;  %1227 = vmatpush3.bf16.msra.mxu1 %v1303_v21  ;;  %p1440_p13 = pneg %p1439_p12 }
  0x18   : > { %v1285_v2 = vld [vmem:[%s1592_s13] sm:$0xff]   ;;  %v1286_v3 = vld [vmem:[%s1592_s13 + $0x8] sm:$0xff]   ;;  %v1287_v4 = vld [vmem:[%s1592_s13 + $0x10] sm:$0xff]   ;;  %1228 = vmatprep.subr.bf16.mxu1 %v1501_v19  ;;  %s1503_s10 = smov [#allocation2]  }
  0x19   : > { %1190 = vmatprep.mubr.msk.bf16.mxu0 %vm360_vm0, %v1285_v2  ;;  %v1288_v5 = vld [vmem:[%s1592_s13 + $0x18] sm:$0xff]   ;;  %v1289_v6 = vld [vmem:[%s1592_s13 + $0x20] sm:$0xff]   ;;  %v1290_v7 = vld [vmem:[%s1592_s13 + $0x28] sm:$0xff]   ;;  %s1441_s11 = sshll.u32 %s1503_s10, 4  ;;  %s1442_s11 = int_to_ptr.vmem [resolvable:$false] %s1441_s11 }
  0x1a   : > { %1191 = vmatmul.mubr.msk.bf16.vlgmr.msra.gmra.mrb[0].mxu0 %vm360_vm0, %v1286_v3  ;;  %v1291_v8 = vld [vmem:[%s1592_s13 + $0x30] sm:$0xff]   ;;  %v1292_v9 = vld [vmem:[%s1592_s13 + $0x38] sm:$0xff]   ;;  %v1293_v10 = vld [vmem:[%s1592_s13 + $0x40] sm:$0xff]   ;;  %s1443_s12 = scalar_lea.vmem %s1442_s11, 32  ;;  %p1444_p0 = scmp.lt.s32.totalorder %s2065_s30, %s1442_s11 }
  0x1b   : > { %1194 = vmatprep.mubr.msk.bf16.mxu0 %vm360_vm0, %v1287_v4  ;;  %v1294_v11 = vld [vmem:[%s1592_s13 + $0x48] sm:$0xff]   ;;  %v1295_v12 = vld [vmem:[%s1592_s13 + $0x50] sm:$0xff]   ;;  %v1296_v13 = vld [vmem:[%s1592_s13 + $0x58] sm:$0xff]   ;;  %1229 = vmatpush3.bf16.msra.mxu1 %v1304_v22  ;;  %p1445_p1 = scmp.lt.s32.totalorder %s1443_s12, %s1437_s22 }
  0x1c   : > { %v1297_v14 = vld [vmem:[%s1592_s13 + $0x60] sm:$0xff]   ;;  %v1298_v15 = vld [vmem:[%s1592_s13 + $0x68] sm:$0xff]   ;;  %v1299_v16 = vld [vmem:[%s1592_s13 + $0x70] sm:$0xff]   ;;  %1230 = vmatprep.subr.bf16.mxu1 %v1501_v19 }
  0x1d   : > { %v1300_v17 = vld [vmem:[%s1592_s13 + $0x78] sm:$0xff]   ;;  %p1446_p2 = por %p1445_p1, %p1444_p0 }
  0x1f   : > { %1231 = vmatpush3.bf16.msra.mxu1 %v1305_v23  ;;  %p1447_p3 = pnand %p1446_p2, %p1440_p13 }
  0x20   : > { %1232 = vmatprep.subr.bf16.mxu1 %v1501_v19 }
  0x22   : > { %1195 = vmatmul.mubr.msk.bf16.gmra.mrb[4].mxu0 %vm360_vm0, %v1288_v5 }
  0x23   : > { %1198 = vmatprep.mubr.msk.bf16.mxu0 %vm360_vm0, %v1289_v6  ;;  %1233 = vmatpush3.bf16.msra.mxu1 %v1306_v26 }
  0x24   : > { %1234 = vmatprep.subr.bf16.mxu1 %v1501_v19 }
  0x27   : > { %1235 = vmatpush3.bf16.msra.mxu1 %v1307_v36 }
  0x28   : > { %1236 = vmatprep.subr.bf16.mxu1 %v1501_v19 }
  0x2a   : > { %1199 = vmatmul.mubr.msk.bf16.gmra.mrb[8].mxu0 %vm360_vm0, %v1290_v7 }
  0x2b   : > { %1202 = vmatprep.mubr.msk.bf16.mxu0 %vm360_vm0, %v1291_v8  ;;  %1237 = vmatpush3.bf16.msra.mxu1 %v1308_v44 }
  0x32   : > { %1203 = vmatmul.mubr.msk.bf16.gmra.mrb[12].mxu0 %vm360_vm0, %v1292_v9 }
  0x33   : > { %1206 = vmatprep.mubr.msk.bf16.mxu0 %vm360_vm0, %v1293_v10 }
  0x3a   : > { %1207 = vmatmul.mubr.msk.bf16.gmra.mrb[16].mxu0 %vm360_vm0, %v1294_v11  ;;  %v1697_v11 = vand.u32 127, %v570_v59 }
  0x3b   : > { %1210 = vmatprep.mubr.msk.bf16.mxu0 %vm360_vm0, %v1295_v12 }
  0x3c   : > { %vm797_vm2 = vcmp.lt.s32.totalorder %v1697_v11, 96  ;;  %vm796_vm3 = vcmp.lt.s32.totalorder %v1697_v11, 64 }
  0x42   : > { %1211 = vmatmul.mubr.msk.bf16.gmra.mrb[20].mxu0 %vm360_vm0, %v1296_v13 }
  0x43   : > { %1214 = vmatprep.mubr.msk.bf16.mxu0 %vm360_vm0, %v1297_v14 }
  0x4a   : > { %1215 = vmatmul.mubr.msk.bf16.gmra.mrb[24].mxu0 %vm360_vm0, %v1298_v15 }
  0x4b   : > { %1218 = vmatprep.mubr.msk.bf16.mxu0 %vm360_vm0, %v1299_v16 }
  0x52   : > { %1219 = vmatmul.mubr.msk.bf16.gmra.mrb[28].mxu0 %vm360_vm0, %v1300_v17 }
  0xed   : > { %v1192_v25 = vpop.f32.mrb[0].mxu0 }
  0xee   : > { %v1650_v27 = vadd.f32 %v1192_v25, %v1644_v24  ;;  %v443_v28 = vpop.f32.mrb[1].mxu0 }
  0xef   : > { %v1653_v29 = vadd.f32 %v1644_v24, %v443_v28  ;;  %v1193_v30 = vpop.f32.mrb[2].mxu0 }
  0xf0   : > { %v606_v31 = vsub.f32 0.0, %v1650_v27  ;;  %v1657_v32 = vadd.f32 %v1193_v30, %v1644_v24  ;;  %v446_v33 = vpop.f32.mrb[3].mxu0  ;;  %v574_v14 = vmax.f32 %v1650_v27, 0.0 }
  0xf1   : > { %v604_v34 = vsub.f32 0.0, %v1653_v29  ;;  %v1661_v35 = vadd.f32 %v1644_v24, %v446_v33  ;;  %v572_v18 = vmax.f32 %v1653_v29, 0.0 }
  0xf2   : > { %v640_v37 = vmul.f32 1.442695, %v606_v31  ;;  %v607_v38 = vsub.f32 0.0, %v1657_v32  ;;  %v800_v23 = vmin.f32 %v574_v14, 6.0  ;;  %v575_v31 = vmax.f32 %v1657_v32, 0.0 }
  0xf3   : > { %v636_v39 = vmul.f32 1.442695, %v604_v34  ;;  %v605_v40 = vsub.f32 0.0, %v1661_v35 }
  0xf4   : > { %1309 = vpow2.f32 %v640_v37  ;;  %v642_v41 = vmul.f32 1.442695, %v607_v38 }
  0xf5   : > { %1311 = vpow2.f32 %v636_v39  ;;  %v638_v42 = vmul.f32 1.442695, %v605_v40  ;;  %v1196_v43 = vpop.f32.mrb[4].mxu0  ;;  %v798_v39 = vmin.f32 %v572_v18, 6.0  ;;  %v573_v40 = vmax.f32 %v1661_v35, 0.0 }
  0xf6   : > { %1313 = vpow2.f32 %v642_v41  ;;  %v1672_v45 = vadd.f32 %v1196_v43, %v1644_v24  ;;  %v459_v46 = vpop.f32.mrb[5].mxu0 }
  0xf7   : > { %1315 = vpow2.f32 %v638_v42  ;;  %v1675_v47 = vadd.f32 %v1644_v24, %v459_v46  ;;  %v1197_v48 = vpop.f32.mrb[6].mxu0 }
  0xf8   : > { %v610_v49 = vsub.f32 0.0, %v1672_v45  ;;  %v1679_v50 = vadd.f32 %v1197_v48, %v1644_v24  ;;  %v462_v51 = vpop.f32.mrb[7].mxu0 }
  0xf9   : > { %v608_v52 = vsub.f32 0.0, %v1675_v47  ;;  %v1683_v53 = vadd.f32 %v1644_v24, %v462_v51 }
  0xfa   : > { %v648_v54 = vmul.f32 1.442695, %v610_v49  ;;  %v611_v55 = vsub.f32 0.0, %v1679_v50  ;;  %v578_v49 = vmax.f32 %v1672_v45, 0.0 }
  0xfb   : > { %v644_v56 = vmul.f32 1.442695, %v608_v52  ;;  %v609_v57 = vsub.f32 0.0, %v1683_v53 }
  0xfc   : > { %1317 = vpow2.f32 %v648_v54  ;;  %v650_v58 = vmul.f32 1.442695, %v611_v55  ;;  %v801_v55 = vmin.f32 %v575_v31, 6.0 }
  0xfd   : > { %1319 = vpow2.f32 %v644_v56  ;;  %v646_v60 = vmul.f32 1.442695, %v609_v57  ;;  %v1200_v61 = vpop.f32.mrb[8].mxu0 }
  0xfe   : > { %v1310_v62 = vpop.eup %1309  ;;  %1321 = vpow2.f32 %v650_v58  ;;  %v1688_v63 = vadd.f32 %v1200_v61, %v1644_v24  ;;  %v475_v0 = vpop.f32.mrb[9].mxu0 }
  0xff   : > { %v1312_v1 = vpop.eup %1311  ;;  %v702_v2 = vadd.f32 1.0, %v1310_v62  ;;  %1323 = vpow2.f32 %v646_v60  ;;  %v1691_v3 = vadd.f32 %v1644_v24, %v475_v0  ;;  %v1201_v4 = vpop.f32.mrb[10].mxu0  ;;  %v576_v60 = vmax.f32 %v1675_v47, 0.0 }
 0x100   : > { %v1314_v5 = vpop.eup %1313  ;;  %v700_v6 = vadd.f32 1.0, %v1312_v1  ;;  %v614_v7 = vsub.f32 0.0, %v1688_v63  ;;  %v1695_v8 = vadd.f32 %v1201_v4, %v1644_v24  ;;  %v478_v9 = vpop.f32.mrb[11].mxu0  ;;  %v799_v1 = vmin.f32 %v573_v40, 6.0 }
 0x101   : > { %v1316_v10 = vpop.eup %1315  ;;  %1325 = vrcp.f32 %v702_v2  ;;  %v703_v12 = vadd.f32 1.0, %v1314_v5  ;;  %v612_v13 = vsub.f32 0.0, %v1691_v3  ;;  %v1704_v20 = vadd.f32 %v1644_v24, %v478_v9 }
 0x102   : > { %1327 = vrcp.f32 %v700_v6  ;;  %v701_v15 = vadd.f32 1.0, %v1316_v10  ;;  %v656_v16 = vmul.f32 1.442695, %v614_v7  ;;  %v615_v19 = vsub.f32 0.0, %v1695_v8 }
 0x103   : > { %1329 = vrcp.f32 %v703_v12  ;;  %v652_v17 = vmul.f32 1.442695, %v612_v13  ;;  %v613_v26 = vsub.f32 0.0, %v1704_v20  ;;  %v804_v7 = vmin.f32 %v578_v49, 6.0 }
 0x104   : > { %1331 = vrcp.f32 %v701_v15  ;;  %v658_v25 = vmul.f32 1.442695, %v615_v19 }
 0x105   : > { %1333 = vpow2.f32 %v656_v16  ;;  %v1204_v21 = vpop.f32.mrb[12].mxu0  ;;  %v654_v46 = vmul.f32 1.442695, %v613_v26 }
 0x106   : > { %v1318_v22 = vpop.eup %1317  ;;  %1335 = vpow2.f32 %v652_v17  ;;  %v491_v28 = vpop.f32.mrb[13].mxu0  ;;  %v1713_v34 = vadd.f32 %v1204_v21, %v1644_v24  ;;  %v802_v21 = vmin.f32 %v576_v60, 6.0 }
 0x107   : > { %v1320_v30 = vpop.eup %1319  ;;  %v706_v33 = vadd.f32 1.0, %v1318_v22  ;;  %v1716_v36 = vadd.f32 %v1644_v24, %v491_v28  ;;  %v1205_v37 = vpop.f32.mrb[14].mxu0  ;;  %1337 = vpow2.f32 %v658_v25  ;;  %v579_v22 = vmax.f32 %v1679_v50, 0.0 }
 0x108   : > { %v1322_v38 = vpop.eup %1321  ;;  %v704_v41 = vadd.f32 1.0, %v1320_v30  ;;  %v494_v42 = vpop.f32.mrb[15].mxu0  ;;  %v618_v48 = vsub.f32 0.0, %v1713_v34  ;;  %v1727_v57 = vadd.f32 %v1205_v37, %v1644_v24  ;;  %v577_v30 = vmax.f32 %v1683_v53, 0.0 }
 0x109   : > { %v1324_v43 = vpop.eup %1323  ;;  %1339 = vrcp.f32 %v706_v33  ;;  %v707_v44 = vadd.f32 1.0, %v1322_v38  ;;  %v616_v52 = vsub.f32 0.0, %v1716_v36  ;;  %v1738_v9 = vadd.f32 %v1644_v24, %v494_v42 }
 0x10a   : > { %1341 = vrcp.f32 %v704_v41  ;;  %v705_v51 = vadd.f32 1.0, %v1324_v43  ;;  %v664_v56 = vmul.f32 1.442695, %v618_v48  ;;  %v619_v2 = vsub.f32 0.0, %v1727_v57 }
 0x10b   : > { %v1326_v54 = vpop.eup %1325  ;;  %1343 = vrcp.f32 %v707_v44  ;;  %v660_v61 = vmul.f32 1.442695, %v616_v52  ;;  %v805_v52 = vmin.f32 %v579_v22, 6.0 }
 0x10c   : > { %v1328_v58 = vpop.eup %1327  ;;  %v766_v59 = vmul.f32 %v1326_v54, %v1650_v27  ;;  %1345 = vrcp.f32 %v705_v51  ;;  %v666_v25 = vmul.f32 1.442695, %v619_v2  ;;  %v617_v27 = vsub.f32 0.0, %v1738_v9 }
 0x10d   : > { %v1330_v62 = vpop.eup %1329  ;;  %v764_v0 = vmul.f32 %v1328_v58, %v1653_v29  ;;  %1347 = vpow2.f32 %v654_v46  ;;  %v1208_v4 = vpop.f32.mrb[16].mxu0  ;;  %v803_v54 = vmin.f32 %v577_v30, 6.0 }
 0x10e   : > { %v1332_v5 = vpop.eup %1331  ;;  %v832_v6 = vsel %vm797_vm2, %v766_v59, %v800_v23  ;;  %1349 = vpow2.f32 %v664_v56  ;;  %v1740_v10 = vpop.f32.mrb[17].mxu0  ;;  %v767_v15 = vmul.f32 %v1330_v62, %v1657_v32  ;;  %v1768_v43 = vadd.f32 %v1208_v4, %v1644_v24 }
 0x10f   : > { %v1334_v12 = vpop.eup %1333  ;;  %v830_v13 = vsel %vm797_vm2, %v764_v0, %v798_v39  ;;  %v765_v16 = vmul.f32 %v1332_v5, %v1661_v35  ;;  %1351 = vpow2.f32 %v660_v61  ;;  %v1209_v17 = vpop.f32.mrb[18].mxu0  ;;  %v864_v28 = vsel %vm796_vm3, %v574_v14, %v832_v6 }
 0x110   : > { %v1336_v19 = vpop.eup %1335  ;;  %v710_v23 = vadd.f32 1.0, %v1334_v12  ;;  %v1749_v26 = vpop.f32.mrb[19].mxu0  ;;  %v862_v38 = vsel %vm796_vm3, %v572_v18, %v830_v13  ;;  %v833_v14 = vsel %vm797_vm2, %v767_v15, %v801_v55  ;;  %v662_v18 = vmul.f32 1.442695, %v617_v27 }
 0x111   : > { %v831_v35 = vsel %vm797_vm2, %v765_v16, %v799_v1  ;;  %v708_v33 = vadd.f32 1.0, %v1336_v19  ;;  %v1338_v37 = vpop.eup %1337  ;;  %v865_v58 = vsel %vm796_vm3, %v575_v31, %v833_v14  ;;  %v622_v61 = vsub.f32 0.0, %v1768_v43 }
 0x112   : > { %v863_v39 = vsel %vm796_vm3, %v573_v40, %v831_v35  ;;  %1353 = vrcp.f32 %v710_v23  ;;  %v711_v46 = vadd.f32 1.0, %v1338_v37  ;;  %v580_v5 = vmax.f32 %v1691_v3, 0.0 }
 0x113   : > { %v1340_v41 = vpop.eup %1339  ;;  %v894_v42 = vadd.f32 %v863_v39, %v862_v38  ;;  %1355 = vrcp.f32 %v708_v33  ;;  %v672_v23 = vmul.f32 1.442695, %v622_v61  ;;  %v1803_v35 = vadd.f32 %v1644_v24, %v1740_v10 }
 0x114   : > { %v1342_v44 = vpop.eup %1341  ;;  %v770_v29 = vmul.f32 %v1340_v41, %v1672_v45  ;;  %1357 = vpow2.f32 %v666_v25  ;;  %v1806_v33 = vadd.f32 %v1209_v17, %v1644_v24  ;;  %v583_v39 = vmax.f32 %v1695_v8, 0.0 }
 0x115   : > { %v1344_v48 = vpop.eup %1343  ;;  %v895_v40 = vadd.f32 %v894_v42, %v864_v28  ;;  %v768_v51 = vmul.f32 %v1342_v44, %v1675_v47  ;;  %v1212_v55 = vpop.f32.mrb[20].mxu0  ;;  %1359 = vpow2.f32 %v662_v18  ;;  %v582_v28 = vmax.f32 %v1688_v63, 0.0 }
 0x116   : > { %v1346_v56 = vpop.eup %1345  ;;  %v771_v59 = vmul.f32 %v1344_v48, %v1679_v50  ;;  %v523_v62 = vpop.f32.mrb[21].mxu0  ;;  %v836_v31 = vsel %vm797_vm2, %v770_v29, %v804_v7  ;;  %1361 = vrcp.f32 %v711_v46  ;;  %v581_v17 = vmax.f32 %v1704_v20, 0.0 }
 0x117   : > { %v1348_v0 = vpop.eup %1347  ;;  %v834_v1 = vsel %vm797_vm2, %v768_v51, %v802_v21  ;;  %v896_v2 = vadd.f32 %v895_v40, %v865_v58  ;;  %v769_v4 = vmul.f32 %v1346_v56, %v1683_v53  ;;  %v1784_v6 = vpop.f32.mrb[22].mxu0  ;;  %v868_v38 = vsel %vm796_vm3, %v578_v49, %v836_v31 }
 0x118   : > { %v1350_v32 = vpop.eup %1349  ;;  %v866_v12 = vsel %vm796_vm3, %v576_v60, %v834_v1  ;;  %v709_v13 = vadd.f32 1.0, %v1348_v0  ;;  %v1792_v15 = vpop.f32.mrb[23].mxu0  ;;  %v837_v53 = vsel %vm797_vm2, %v771_v59, %v805_v52  ;;  %v620_v49 = vsub.f32 0.0, %v1803_v35 }
 0x119   : > { %v1352_v16 = vpop.eup %1351  ;;  %v897_v19 = vadd.f32 %v896_v2, %v866_v12  ;;  %v835_v21 = vsel %vm797_vm2, %v769_v4, %v803_v54  ;;  %v714_v47 = vadd.f32 1.0, %v1350_v32  ;;  %v869_v10 = vsel %vm796_vm3, %v579_v22, %v837_v53 }
 0x11a   : > { %v867_v7 = vsel %vm796_vm3, %v577_v30, %v835_v21  ;;  %1363 = vrcp.f32 %v709_v13  ;;  %v712_v25 = vadd.f32 1.0, %v1352_v16  ;;  %v806_v30 = vmin.f32 %v580_v5, 6.0 }
 0x11b   : > { %v898_v60 = vadd.f32 %v897_v19, %v867_v7  ;;  %v623_v44 = vsub.f32 0.0, %v1806_v33  ;;  %v1827_v22 = vadd.f32 %v1644_v24, %v1749_v26  ;;  %v1830_v18 = vadd.f32 %v1212_v55, %v1644_v24 }
 0x11c   : > { %v1354_v37 = vpop.eup %1353  ;;  %1365 = vrcp.f32 %v712_v25  ;;  %v668_v52 = vmul.f32 1.442695, %v620_v49  ;;  %v1838_v54 = vadd.f32 %v1644_v24, %v523_v62  ;;  %v808_v61 = vmin.f32 %v582_v28, 6.0 }
 0x11d   : > { %v1356_v27 = vpop.eup %1355  ;;  %v899_v41 = vadd.f32 %v898_v60, %v868_v38  ;;  %1367 = vpow2.f32 %v672_v23  ;;  %v1818_v14 = vpop.f32.mrb[24].mxu0  ;;  %v674_v58 = vmul.f32 1.442695, %v623_v44  ;;  %v584_v1 = vmax.f32 %v1716_v36, 0.0 }
 0x11e   : > { %v1358_v45 = vpop.eup %1357  ;;  %v772_v42 = vmul.f32 %v1356_v27, %v1691_v3  ;;  %1369 = vrcp.f32 %v714_v47  ;;  %v1823_v29 = vpop.f32.mrb[25].mxu0  ;;  %v774_v3 = vmul.f32 %v1354_v37, %v1688_v63  ;;  %v809_v62 = vmin.f32 %v583_v39, 6.0 }
 0x11f   : > { %v900_v50 = vadd.f32 %v899_v41, %v869_v10  ;;  %v715_v46 = vadd.f32 1.0, %v1358_v45  ;;  %v1832_v48 = vpop.f32.mrb[26].mxu0  ;;  %v1360_v40 = vpop.eup %1359  ;;  %v807_v2 = vmin.f32 %v581_v17, 6.0  ;;  %v621_v4 = vsub.f32 0.0, %v1827_v22 }
 0x120   : > { %v838_v51 = vsel %vm797_vm2, %v772_v42, %v806_v30  ;;  %v1840_v56 = vpop.f32.mrb[27].mxu0  ;;  %v713_v55 = vadd.f32 1.0, %v1360_v40  ;;  %v1362_v59 = vpop.eup %1361  ;;  %v586_v31 = vmax.f32 %v1713_v34, 0.0  ;;  %v626_v12 = vsub.f32 0.0, %v1830_v18 }
 0x121   : > { %v870_v26 = vsel %vm796_vm3, %v580_v5, %v838_v51  ;;  %1371 = vrcp.f32 %v715_v46  ;;  %v840_v5 = vsel %vm797_vm2, %v774_v3, %v808_v61  ;;  %v775_v13 = vmul.f32 %v1362_v59, %v1695_v8 }
 0x122   : > { %v901_v0 = vadd.f32 %v900_v50, %v870_v26  ;;  %1373 = vpow2.f32 %v668_v52  ;;  %v670_v19 = vmul.f32 1.442695, %v621_v4  ;;  %v624_v53 = vsub.f32 0.0, %v1838_v54 }
 0x123   : > { %1375 = vrcp.f32 %v713_v55  ;;  %v810_v7 = vmin.f32 %v584_v1, 6.0  ;;  %v587_v47 = vmax.f32 %v1727_v57, 0.0  ;;  %v585_v25 = vmax.f32 %v1738_v9, 0.0 }
 0x124   : > { %v1364_v32 = vpop.eup %1363  ;;  %1377 = vpow2.f32 %v674_v58  ;;  %v680_v60 = vmul.f32 1.442695, %v626_v12  ;;  %v676_v27 = vmul.f32 1.442695, %v624_v53  ;;  %v872_v45 = vsel %vm796_vm3, %v582_v28, %v840_v5 }
 0x125   : > { %v773_v16 = vmul.f32 %v1364_v32, %v1704_v20  ;;  %v1857_v21 = vpop.f32.mrb[28].mxu0  ;;  %1379 = vpow2.f32 %v670_v19  ;;  %v841_v44 = vsel %vm797_vm2, %v775_v13, %v809_v62  ;;  %v1882_v63 = vadd.f32 %v1784_v6, %v1644_v24 }
 0x126   : > { %v1366_v23 = vpop.eup %1365  ;;  %v1861_v37 = vpop.f32.mrb[29].mxu0  ;;  %1381 = vpow2.f32 %v676_v27  ;;  %v1886_v28 = vadd.f32 %v1644_v24, %v1792_v15  ;;  %v812_v3 = vmin.f32 %v586_v31, 6.0  ;;  %v813_v51 = vmin.f32 %v587_v47, 6.0 }
 0x127   : > { %v1368_v38 = vpop.eup %1367  ;;  %v839_v30 = vsel %vm797_vm2, %v773_v16, %v807_v2  ;;  %v776_v20 = vmul.f32 %v1366_v23, %v1716_v36  ;;  %v1866_v10 = vpop.f32.mrb[30].mxu0  ;;  %1383 = vpow2.f32 %v680_v60  ;;  %v811_v52 = vmin.f32 %v585_v25, 6.0 }
 0x128   : > { %v1370_v41 = vpop.eup %1369  ;;  %v871_v42 = vsel %vm796_vm3, %v581_v17, %v839_v30  ;;  %v1874_v49 = vpop.f32.mrb[31].mxu0  ;;  %v718_v46 = vadd.f32 1.0, %v1368_v38  ;;  %v873_v6 = vsel %vm796_vm3, %v583_v39, %v841_v44  ;;  %v627_v58 = vsub.f32 0.0, %v1882_v63 }
 0x129   : > { %v902_v50 = vadd.f32 %v901_v0, %v871_v42  ;;  %v842_v36 = vsel %vm797_vm2, %v776_v20, %v810_v7  ;;  %v778_v55 = vmul.f32 %v1370_v41, %v1713_v34  ;;  %v625_v62 = vsub.f32 0.0, %v1886_v28 }
 0x12a   : > { %v874_v15 = vsel %vm796_vm3, %v584_v1, %v842_v36  ;;  %v1903_v2 = vadd.f32 %v1818_v14, %v1644_v24  ;;  %1385 = vrcp.f32 %v718_v46  ;;  %v682_v32 = vmul.f32 1.442695, %v627_v58 }
 0x12b   : > { %v1372_v17 = vpop.eup %1371  ;;  %v903_v40 = vadd.f32 %v902_v50, %v872_v45  ;;  %v1909_v12 = vadd.f32 %v1644_v24, %v1823_v29  ;;  %v844_v13 = vsel %vm797_vm2, %v778_v55, %v812_v3  ;;  %v678_v16 = vmul.f32 1.442695, %v625_v62 }
 0x12c   : > { %v1374_v26 = vpop.eup %1373  ;;  %v779_v4 = vmul.f32 %v1372_v17, %v1727_v57  ;;  %v630_v53 = vsub.f32 0.0, %v1903_v2  ;;  %v1920_v23 = vadd.f32 %v1832_v48, %v1644_v24  ;;  %v876_v30 = vsel %vm796_vm3, %v586_v31, %v844_v13 }
 0x12d   : > { %v1376_v59 = vpop.eup %1375  ;;  %v904_v61 = vadd.f32 %v903_v40, %v873_v6  ;;  %v716_v0 = vadd.f32 1.0, %v1374_v26  ;;  %v628_v20 = vsub.f32 0.0, %v1909_v12  ;;  %v588_v34 = vmax.f32 %v1803_v35, 0.0 }
 0x12e   : > { %v1378_v8 = vpop.eup %1377  ;;  %v777_v39 = vmul.f32 %v1376_v59, %v1738_v9  ;;  %v845_v29 = vsel %vm797_vm2, %v779_v4, %v813_v51  ;;  %v631_v44 = vsub.f32 0.0, %v1920_v23  ;;  %v1937_v31 = vadd.f32 %v1644_v24, %v1840_v56 }
 0x12f   : > { %v905_v5 = vadd.f32 %v904_v61, %v874_v15  ;;  %1387 = vrcp.f32 %v716_v0  ;;  %v719_v1 = vadd.f32 1.0, %v1378_v8  ;;  %v1380_v19 = vpop.eup %1379  ;;  %v877_v45 = vsel %vm796_vm3, %v587_v47, %v845_v29 }
 0x130   : > { %v843_v14 = vsel %vm797_vm2, %v777_v39, %v811_v52  ;;  %1389 = vpow2.f32 %v682_v32  ;;  %v717_v60 = vadd.f32 1.0, %v1380_v19  ;;  %v1382_v38 = vpop.eup %1381  ;;  %v684_v42 = vmul.f32 1.442695, %v628_v20 }
 0x131   : > { %v875_v9 = vsel %vm796_vm3, %v585_v25, %v843_v14  ;;  %1391 = vrcp.f32 %v719_v1  ;;  %v688_v25 = vmul.f32 1.442695, %v630_v53  ;;  %v1384_v27 = vpop.eup %1383  ;;  %v720_v48 = vadd.f32 1.0, %v1382_v38 }
 0x132   : > { %v906_v7 = vadd.f32 %v905_v5, %v875_v9  ;;  %1393 = vpow2.f32 %v678_v16  ;;  %v722_v36 = vadd.f32 1.0, %v1384_v27  ;;  %v690_v46 = vmul.f32 1.442695, %v631_v44 }
 0x133   : > { %1395 = vrcp.f32 %v717_v60  ;;  %v1941_v57 = vadd.f32 %v1857_v21, %v1644_v24  ;;  %v629_v47 = vsub.f32 0.0, %v1937_v31  ;;  %v590_v3 = vmax.f32 %v1768_v43, 0.0 }
 0x134   : > { %v907_v41 = vadd.f32 %v906_v7, %v876_v30  ;;  %1397 = vrcp.f32 %v720_v48  ;;  %v1386_v17 = vpop.eup %1385  ;;  %v591_v51 = vmax.f32 %v1806_v33, 0.0  ;;  %v1948_v56 = vadd.f32 %v1644_v24, %v1861_v37 }
 0x135   : > { %1399 = vpow2.f32 %v688_v25  ;;  %v814_v6 = vmin.f32 %v588_v34, 6.0  ;;  %v686_v21 = vmul.f32 1.442695, %v629_v47  ;;  %v634_v55 = vsub.f32 0.0, %v1941_v57 }
 0x136   : > { %v908_v50 = vadd.f32 %v907_v41, %v877_v45  ;;  %1401 = vpow2.f32 %v684_v42  ;;  %v589_v58 = vmax.f32 %v1827_v22, 0.0  ;;  %v592_v59 = vmax.f32 %v1838_v54, 0.0 }
 0x137   : > { %1403 = vpow2.f32 %v690_v46  ;;  %v632_v37 = vsub.f32 0.0, %v1948_v56  ;;  %v782_v8 = vmul.f32 %v1386_v17, %v1768_v43  ;;  %v696_v13 = vmul.f32 1.442695, %v634_v55 }
 0x138   : > { %1405 = vrcp.f32 %v722_v36  ;;  %v816_v16 = vmin.f32 %v590_v3, 6.0  ;;  %v815_v9 = vmin.f32 %v589_v58, 6.0  ;;  %v817_v53 = vmin.f32 %v591_v51, 6.0 }
 0x139   : > { %v1388_v40 = vpop.eup %1387  ;;  %1407 = vpow2.f32 %v686_v21  ;;  %v692_v14 = vmul.f32 1.442695, %v632_v37  ;;  %v818_v29 = vmin.f32 %v592_v59, 6.0  ;;  %v595_v55 = vmax.f32 %v1882_v63, 0.0 }
 0x13a   : > { %v1390_v52 = vpop.eup %1389  ;;  %v780_v26 = vmul.f32 %v1388_v40, %v1803_v35  ;;  %v1959_v35 = vadd.f32 %v1866_v10, %v1644_v24  ;;  %v848_v60 = vsel %vm797_vm2, %v782_v8, %v816_v16  ;;  %v593_v40 = vmax.f32 %v1886_v28, 0.0 }
 0x13b   : > { %v1392_v15 = vpop.eup %1391  ;;  %v723_v61 = vadd.f32 1.0, %v1390_v52  ;;  %v598_v16 = vmax.f32 %v1903_v2, 0.0 }
 0x13c   : > { %v1394_v0 = vpop.eup %1393  ;;  %v846_v62 = vsel %vm797_vm2, %v780_v26, %v814_v6  ;;  %v783_v1 = vmul.f32 %v1392_v15, %v1806_v33  ;;  %v635_v43 = vsub.f32 0.0, %v1959_v35 }
 0x13d   : > { %v878_v4 = vsel %vm796_vm3, %v588_v34, %v846_v62  ;;  %1409 = vrcp.f32 %v723_v61  ;;  %v721_v39 = vadd.f32 1.0, %v1394_v0  ;;  %v1396_v32 = vpop.eup %1395  ;;  %v819_v62 = vmin.f32 %v593_v40, 6.0 }
 0x13e   : > { %v909_v5 = vadd.f32 %v908_v50, %v878_v4  ;;  %v781_v19 = vmul.f32 %v1396_v32, %v1827_v22  ;;  %v1398_v10 = vpop.eup %1397  ;;  %v1974_v22 = vadd.f32 %v1644_v24, %v1874_v49  ;;  %v849_v25 = vsel %vm797_vm2, %v783_v1, %v817_v53 }
 0x13f   : > { %1411 = vrcp.f32 %v721_v39  ;;  %v1400_v7 = vpop.eup %1399  ;;  %v784_v38 = vmul.f32 %v1398_v10, %v1838_v54  ;;  %v698_v54 = vmul.f32 1.442695, %v635_v43  ;;  %v880_v24 = vsel %vm796_vm3, %v590_v3, %v848_v60 }
 0x140   : > { %1413 = vpow2.f32 %v692_v14  ;;  %v847_v33 = vsel %vm797_vm2, %v781_v19, %v815_v9  ;;  %v1402_v30 = vpop.eup %1401  ;;  %v726_v27 = vadd.f32 1.0, %v1400_v7  ;;  %v594_v50 = vmax.f32 %v1830_v18, 0.0 }
 0x141   : > { %v879_v20 = vsel %vm796_vm3, %v589_v58, %v847_v33  ;;  %1415 = vpow2.f32 %v696_v13  ;;  %v1404_v41 = vpop.eup %1403  ;;  %v850_v45 = vsel %vm797_vm2, %v784_v38, %v818_v29  ;;  %v724_v42 = vadd.f32 1.0, %v1402_v30 }
 0x142   : > { %v910_v48 = vadd.f32 %v909_v5, %v879_v20  ;;  %1417 = vrcp.f32 %v726_v27  ;;  %v727_v49 = vadd.f32 1.0, %v1404_v41  ;;  %v1406_v44 = vpop.eup %1405  ;;  %v633_v36 = vsub.f32 0.0, %v1974_v22 }
 0x143   : > { %1419 = vrcp.f32 %v724_v42  ;;  %v1408_v46 = vpop.eup %1407  ;;  %v881_v17 = vsel %vm796_vm3, %v591_v51, %v849_v25  ;;  %v882_v47 = vsel %vm796_vm3, %v592_v59, %v850_v45  ;;  %v786_v21 = vmul.f32 %v1406_v44, %v1830_v18 }
 0x144   : > { %v911_v34 = vadd.f32 %v910_v48, %v880_v24  ;;  %1421 = vrcp.f32 %v727_v49  ;;  %v725_v26 = vadd.f32 1.0, %v1408_v46  ;;  %v694_v6 = vmul.f32 1.442695, %v633_v36 }
 0x145   : > { %1423 = vpow2.f32 %v698_v54  ;;  %v820_v58 = vmin.f32 %v594_v50, 6.0  ;;  %v821_v39 = vmin.f32 %v595_v55, 6.0  ;;  %v596_v32 = vmax.f32 %v1909_v12, 0.0 }
 0x146   : > { %v912_v52 = vadd.f32 %v911_v34, %v881_v17  ;;  %1425 = vrcp.f32 %v725_v26  ;;  %v597_v19 = vmax.f32 %v1937_v31, 0.0  ;;  %v599_v33 = vmax.f32 %v1920_v23, 0.0 }
 0x147   : > { %v1410_v3 = vpop.eup %1409  ;;  %1427 = vpow2.f32 %v694_v6  ;;  %v852_v4 = vsel %vm797_vm2, %v786_v21, %v820_v58  ;;  %v822_v43 = vmin.f32 %v596_v32, 6.0  ;;  %v824_v41 = vmin.f32 %v598_v16, 6.0 }
 0x148   : > { %v913_v61 = vadd.f32 %v912_v52, %v882_v47  ;;  %v787_v0 = vmul.f32 %v1410_v3, %v1882_v63  ;;  %v884_v14 = vsel %vm796_vm3, %v594_v50, %v852_v4  ;;  %v825_v34 = vmin.f32 %v599_v33, 6.0 }
 0x149   : > { %v1412_v15 = vpop.eup %1411 }
 0x14a   : > { %v1414_v51 = vpop.eup %1413  ;;  %v785_v59 = vmul.f32 %v1412_v15, %v1886_v28  ;;  %v853_v28 = vsel %vm797_vm2, %v787_v0, %v821_v39  ;;  %v602_v15 = vmax.f32 %v1941_v57, 0.0  ;;  %v603_v0 = vmax.f32 %v1959_v35, 0.0 }
 0x14b   : > { %v728_v37 = vadd.f32 1.0, %v1414_v51  ;;  %v1416_v8 = vpop.eup %1415  ;;  %v885_v60 = vsel %vm796_vm3, %v595_v55, %v853_v28 }
 0x14c   : > { %v851_v18 = vsel %vm797_vm2, %v785_v59, %v819_v62  ;;  %v1418_v63 = vpop.eup %1417  ;;  %v730_v9 = vadd.f32 1.0, %v1416_v8  ;;  %v828_v62 = vmin.f32 %v602_v15, 6.0 }
 0x14d   : > { %v883_v5 = vsel %vm796_vm3, %v593_v40, %v851_v18  ;;  %1429 = vrcp.f32 %v728_v37  ;;  %v1420_v13 = vpop.eup %1419  ;;  %v790_v38 = vmul.f32 %v1418_v63, %v1903_v2  ;;  %v600_v2 = vmax.f32 %v1948_v56, 0.0 }
 0x14e   : > { %v914_v1 = vadd.f32 %v913_v61, %v883_v5  ;;  %v1422_v10 = vpop.eup %1421  ;;  %v788_v29 = vmul.f32 %v1420_v13, %v1909_v12  ;;  %v823_v12 = vmin.f32 %v597_v19, 6.0  ;;  %1431 = vrcp.f32 %v730_v9 }
 0x14f   : > { %v1424_v7 = vpop.eup %1423  ;;  %v791_v54 = vmul.f32 %v1422_v10, %v1920_v23  ;;  %v856_v44 = vsel %vm797_vm2, %v790_v38, %v824_v41  ;;  %v826_v47 = vmin.f32 %v600_v2, 6.0  ;;  %v829_v18 = vmin.f32 %v603_v0, 6.0 }
 0x150   : > { %v915_v53 = vadd.f32 %v914_v1, %v884_v14  ;;  %v854_v30 = vsel %vm797_vm2, %v788_v29, %v822_v43  ;;  %v731_v20 = vadd.f32 1.0, %v1424_v7  ;;  %v1426_v27 = vpop.eup %1425  ;;  %v888_v40 = vsel %vm796_vm3, %v598_v16, %v856_v44  ;;  %v949_v43 = vld [vmem:[%s2109_s4] sm:$0x1] }
 0x151   : > { %v886_v48 = vsel %vm796_vm3, %v596_v32, %v854_v30  ;;  %v1428_v45 = vpop.eup %1427  ;;  %v789_v24 = vmul.f32 %v1426_v27, %v1937_v31  ;;  %v857_v23 = vsel %vm797_vm2, %v791_v54, %v825_v34 }
 0x152   : > { %v916_v25 = vadd.f32 %v915_v53, %v885_v60  ;;  %1433 = vrcp.f32 %v731_v20  ;;  %v729_v49 = vadd.f32 1.0, %v1428_v45  ;;  %v889_v26 = vsel %vm796_vm3, %v599_v33, %v857_v23 }
 0x153   : > { %v855_v50 = vsel %vm797_vm2, %v789_v24, %v823_v12 }
 0x154   : > { %v917_v42 = vadd.f32 %v916_v25, %v886_v48  ;;  %v887_v46 = vsel %vm796_vm3, %v597_v19, %v855_v50  ;;  %1435 = vrcp.f32 %v729_v49 }
 0x156   : > { %v918_v31 = vadd.f32 %v917_v42, %v887_v46 }
 0x157   : > { %v1430_v36 = vpop.eup %1429 }
 0x158   : > { %v792_v17 = vmul.f32 %v1430_v36, %v1948_v56  ;;  %v919_v3 = vadd.f32 %v918_v31, %v888_v40  ;;  %v1432_v55 = vpop.eup %1431  ;;  %v601_v56 = vmax.f32 %v1974_v22, 0.0 }
 0x159   : > { %v794_v51 = vmul.f32 %v1432_v55, %v1941_v57 }
 0x15a   : > { %v858_v52 = vsel %vm797_vm2, %v792_v17, %v826_v47  ;;  %v920_v21 = vadd.f32 %v919_v3, %v889_v26  ;;  %v827_v4 = vmin.f32 %v601_v56, 6.0 }
 0x15b   : > { %v890_v6 = vsel %vm796_vm3, %v600_v2, %v858_v52  ;;  %v860_v39 = vsel %vm797_vm2, %v794_v51, %v828_v62 }
 0x15c   : > { %v921_v58 = vadd.f32 %v920_v21, %v890_v6  ;;  %v1434_v61 = vpop.eup %1433 }
 0x15d   : > { %v795_v37 = vmul.f32 %v1434_v61, %v1959_v35  ;;  %v892_v35 = vsel %vm796_vm3, %v602_v15, %v860_v39 }
 0x15e   : > { %v1436_v59 = vpop.eup %1435 }
 0x15f   : > { %v793_v8 = vmul.f32 %v1436_v59, %v1974_v22  ;;  %v861_v57 = vsel %vm797_vm2, %v795_v37, %v829_v18 }
 0x160   : > { %v893_v28 = vsel %vm796_vm3, %v603_v0, %v861_v57 }
 0x161   : > { %v859_v32 = vsel %vm797_vm2, %v793_v8, %v827_v4 }
 0x162   : > { %v891_v5 = vsel %vm796_vm3, %v601_v56, %v859_v32 }
 0x163   : > { %v922_v63 = vadd.f32 %v921_v58, %v891_v5 }
 0x165   : > { %v923_v22 = vadd.f32 %v922_v63, %v892_v35 }
 0x167   : > { %v924_v1 = vadd.f32 %v923_v22, %v893_v28 }
 0x169   : > { %v925_v13 = vrot.slane %v924_v1, 4 }
 0x16b   : > { %v926_v14 = vadd.f32 %v925_v13, %v924_v1 }
 0x16d   : > { %v927_v16 = vrot.slane %v926_v14, 2 }
 0x16f   : > { %v928_v19 = vadd.f32 %v927_v16, %v926_v14 }
 0x171   : > { %v929_v9 = vrot.slane %v928_v19, 1 }
 0x173   : > { %v930_v10 = vadd.f32 %v929_v9, %v928_v19 }
 0x175   : > { %v931_v53 = vmul.f32 0.00390625, %v930_v10 }
 0x177   : > { %v932_v29 = vpack.c.bf16 %v931_v53, %v931_v53 }
 0x179   : > { %1239 = vmatmul.mubr.bf16.vlgmr.msra.gmra.mrb[0].mxu1 %v932_v29 }
 0x24c   : > { %v1032_v11 = vpop.f32.mrb[0].mxu1 }
 0x24d   : > { %v1033_v7 = vadd.f32 %v1032_v11, %v949_v43  ;;  %v1240_v60 = vpop.f32.mrb[1].mxu1 }
 0x24e   : > { %v1035_v33 = vpop.f32.mrb[2].mxu1 }
 0x24f   : > { %1038 = vst [vmem:[%s217_s26] sm:$0x1] %v1033_v7  ;;  %v1241_v38 = vpop.f32.mrb[3].mxu1 }
 0x250   : > { %1450 = shalt.err (!%p1447_p3)
}
 0x251   : > { %s1451_s13 = scalar_lea.hbm %s2063_s8, 16  ;;  %s1455_s16 = scalar_lea.hbm %s2110_s5, 32 }
 0x252   : > { %p1452_p4 = scmp.ne.s32.totalorder %s2063_s8, %s1451_s13  ;;  %p1456_p9 = scmp.lt.u32.totalorder %s2063_s8, %s2110_s5 }
 0x253   : > { %p1457_p10 = scmp.lt.u32.totalorder %s1455_s16, %s1451_s13  ;;  %p1459_p12 = scmp.lt.u32.totalorder %s1451_s13, %s2063_s8 }
 0x254   : > { %p1453_p7 = pnand %p1452_p4, %p1572_p5 }
 0x255   : > { %p1458_p11 = por %p1457_p10, %p1456_p9 }
 0x256   : > { %p1454_p8 = pneg %p1453_p7 }
 0x257   : > { %p1460_p13 = por %p1459_p12, %p1458_p11 }
 0x259   : > { %p1461_p0 = pnand %p1460_p13, %p1454_p8 }
 0x25b   : > { %1464 = shalt.err (!%p1461_p0)
}
 0x25c   : > { %1242 = dma.vmem_to_hbm [thread:$0]  (%p1572_p5), %s2065_s30, 16, %s2063_s8, %s1040_s9  }
 0x25d PF: > { %p1248_p1 = scmp.ge.s32.totalorder %s1499_s21, 2  ;;  %s1064_s25 = sand.u32 1, %s1487_s18  }
 0x25e   : > { %s1065_s26 = scalar_lea.sflag [#allocation3], %s1064_s25 }
 0x25f   : > { %p1245_p2 = pnand %p1248_p1, %p1576_p6 }
 0x261   : > { %1482 = dma.done.wait (!%p1245_p2), %s1065_s26, 16  }
 0x262   : > { %1484 = vsyncadd (!%p1245_p2), %s1065_s26, 4294967280  ;;  %p15_p3 = scmp.ge.s32.totalorder %s1559_s24, 4   ;;  %s2113_s18 = smov %s1491_s19 }
 0x263   : > { %s2114_s19 = smov %s1495_s20  ;;  %s2115_s20 = smov %s1570_s27 }
 0x264   : > { %s2116_s21 = smov %s1559_s24  ;;  %17 = sbr.rel (!%p15_p3) target bundleno = 3 (0x3), region = 75 }
 0x26b   :  { %1069 = vsyncpa [#allocation3], 1 }
 0x26c   :  { %1071 = vsyncpa [#allocation3 + $0x1], 1 }

</bundles_post_ra>
